<compile_context>
chip_gen: v6e
topology: v6e:2x2x1
jax: 0.10.0
libtpu: 0.0.40
codegen_flags: <defaults>
</compile_context>

<pallas_src>
import functools

import jax
import jax.numpy as jnp
from jax.experimental import pallas as pl
from jax.experimental.pallas import tpu as pltpu


LANE = 128                         # feature dims padded to multiples of this
TILE_BASE = 256                    # node-count padding granularity (MXU-friendly)
ROW_TILE_CAP = 512                 # Stage-2/3 row tile (tm) upper bound
SRC_TILE_CAP = 2048                # Stage-2/3 reduction tile (tk) upper bound
Z_RESIDENT_BYTES = 16 * 1024 * 1024  # keep Z fully VMEM-resident below this


def _round_up(x, m):
    return ((x + m - 1) // m) * m


def _largest_tile(n_pad, cap):
    """Largest multiple of TILE_BASE that divides n_pad and is <= cap."""
    t = min(cap, n_pad)
    while n_pad % t != 0:
        t -= TILE_BASE
    return t


def _choose_tiles(n_pad):
    tm = _largest_tile(n_pad, ROW_TILE_CAP)
    # Keep >= 2 row blocks when possible so the "parallel" axis can shard
    # across both TensorCores on v7x.
    if n_pad // tm < 2 and tm > TILE_BASE:
        tm = _largest_tile(n_pad, tm // 2)
    tk = _largest_tile(n_pad, SRC_TILE_CAP)
    return tm, tk


def _stage2_vmem_bytes(tm, tk, n_pad, f_out, resident_z, fused):
    """Rough double-buffered VMEM footprint of one aggregation pallas_call."""
    byt = 2 * tm * tk * 2                        # A tiles (bf16) x2 buffers
    byt += 2 * (n_pad if resident_z else tk) * f_out * 2   # Z (bf16)
    byt += 2 * tm * f_out * 4                    # self term S (f32)
    byt += tm * f_out * 4                        # f32 accumulator scratch
    if fused:
        byt += 2 * 2 * f_out * f_out * 2         # W_l2 / W_r2 (bf16)
        byt += 2 * 8 * f_out * 4                 # b2 (padded to (8,128))
        byt += 2 * tm * f_out * 2                # Z2 out (bf16)
        byt += 2 * tm * f_out * 4                # S2 out (f32)
    else:
        byt += 2 * tm * f_out * 4                # final output (f32)
    return byt


def _vmem_limit_bytes(needed_bytes):
    """Scoped-VMEM request: actual need + headroom, capped well below physical."""
    try:
        phys = int(pltpu.get_tpu_info().vmem_capacity_bytes)
    except Exception:
        phys = 64 * 1024 * 1024                  # most conservative (v7x per-TC)
    cap = (phys * 3) // 4
    budget = int(needed_bytes * 1.25) + (8 << 20)
    return max(min(budget, cap), 16 << 20)


# ---------------------------------------------------------------------------
# Stage 1: per-node linear transforms  Z = X @ W_l (bf16),  S = X @ W_r + b (f32)
# ---------------------------------------------------------------------------
def _linear_kernel(x_ref, wl_ref, wr_ref, b_ref, z_ref, s_ref):
    x = x_ref[...]                                            # bf16
    z_ref[...] = jnp.dot(x, wl_ref[...],
                         preferred_element_type=jnp.float32).astype(z_ref.dtype)
    s_ref[...] = (jnp.dot(x, wr_ref[...],
                          preferred_element_type=jnp.float32) + b_ref[...])


def _linear_stage(x_bf16, w_l, w_r, b, *, tm):
    n_pad, f_in = x_bf16.shape
    f_out = w_l.shape[1]
    return pl.pallas_call(
        _linear_kernel,
        out_shape=(jax.ShapeDtypeStruct((n_pad, f_out), jnp.bfloat16),
                   jax.ShapeDtypeStruct((n_pad, f_out), jnp.float32)),
        grid=(n_pad // tm,),
        in_specs=[
            pl.BlockSpec((tm, f_in), lambda i: (i, 0)),
            pl.BlockSpec((f_in, f_out), lambda i: (0, 0)),    # weights VMEM-resident
            pl.BlockSpec((f_in, f_out), lambda i: (0, 0)),
            pl.BlockSpec((1, f_out), lambda i: (0, 0)),
        ],
        out_specs=(pl.BlockSpec((tm, f_out), lambda i: (i, 0)),
                   pl.BlockSpec((tm, f_out), lambda i: (i, 0))),
        compiler_params=pltpu.CompilerParams(
            dimension_semantics=("parallel",)),
    )(x_bf16, w_l, w_r, b.reshape(1, f_out))


# ---------------------------------------------------------------------------
# Stage 2: layer-1 aggregation  h = relu(A @ Z1 + S1), fused with layer-2 linear:
#          Z2 = h @ W_l2 (bf16),  S2 = h @ W_r2 + b2 (f32)
# ---------------------------------------------------------------------------
def _agg_fuse_next_kernel(a_ref, z_ref, s_ref, wl2_ref, wr2_ref, b2_ref,
                          z2_ref, s2_ref, acc_ref, *, tk, resident_z):
    k = pl.program_id(1)

    @pl.when(k == 0)
    def _():
        acc_ref[...] = s_ref[...]          # seed accumulator with the self term

    if resident_z:
        z_blk = z_ref[pl.ds(pl.multiple_of(k * tk, tk), tk), :]
    else:
        z_blk = z_ref[...]

    acc_ref[...] += jnp.dot(a_ref[...], z_blk,
                            preferred_element_type=jnp.float32)

    @pl.when(k == pl.num_programs(1) - 1)
    def _():
        h = jnp.maximum(acc_ref[...], 0.0)                 # relu(conv1)
        h_bf = h.astype(jnp.bfloat16)
        # Fused layer-2 "Stage 1": h never makes an HBM round trip.
        z2_ref[...] = jnp.dot(h_bf, wl2_ref[...],
                              preferred_element_type=jnp.float32
                              ).astype(z2_ref.dtype)
        s2_ref[...] = (jnp.dot(h_bf, wr2_ref[...],
                               preferred_element_type=jnp.float32)
                       + b2_ref[...])


# ---------------------------------------------------------------------------
# Stage 3: layer-2 aggregation  out = relu(A @ Z2 + S2)
# ---------------------------------------------------------------------------
def _agg_final_kernel(a_ref, z_ref, s_ref, o_ref, acc_ref, *, tk, resident_z):
    k = pl.program_id(1)

    @pl.when(k == 0)
    def _():
        acc_ref[...] = s_ref[...]

    if resident_z:
        z_blk = z_ref[pl.ds(pl.multiple_of(k * tk, tk), tk), :]
    else:
        z_blk = z_ref[...]

    acc_ref[...] += jnp.dot(a_ref[...], z_blk,
                            preferred_element_type=jnp.float32)

    @pl.when(k == pl.num_programs(1) - 1)
    def _():
        o_ref[...] = jnp.maximum(acc_ref[...], 0.0).astype(o_ref.dtype)


def _aggregate_stage(a_norm, z, s, *, tm, tk, next_params=None):
    """Tiled A_norm @ Z + S aggregation with relu epilogue.

    If next_params=(W_l2, W_r2, b2) is given, the epilogue also computes the
    next layer's linear transforms and returns (Z2_bf16, S2_f32); otherwise the
    f32 relu output is returned.
    """
    n_pad, f_out = z.shape
    resident_z = (n_pad * f_out * 2) <= Z_RESIDENT_BYTES
    grid = (n_pad // tm, n_pad // tk)

    a_spec = pl.BlockSpec((tm, tk), lambda i, k: (i, k))
    if resident_z:
        z_spec = pl.BlockSpec((n_pad, f_out), lambda i, k: (0, 0))  # VMEM-resident
    else:
        z_spec = pl.BlockSpec((tk, f_out), lambda i, k: (k, 0))
    s_spec = pl.BlockSpec((tm, f_out), lambda i, k: (i, 0))
    row_spec = pl.BlockSpec((tm, f_out), lambda i, k: (i, 0))

    fused = next_params is not None
    cparams = pltpu.CompilerParams(
        dimension_semantics=("parallel", "arbitrary"),
        vmem_limit_bytes=_vmem_limit_bytes(
            _stage2_vmem_bytes(tm, tk, n_pad, f_out, resident_z, fused)))

    if not fused:
        kernel = functools.partial(_agg_final_kernel, tk=tk, resident_z=resident_z)
        return pl.pallas_call(
            kernel,
            out_shape=jax.ShapeDtypeStruct((n_pad, f_out), jnp.float32),
            grid=grid,
            in_specs=[a_spec, z_spec, s_spec],
            out_specs=row_spec,
            scratch_shapes=[pltpu.VMEM((tm, f_out), jnp.float32)],
            compiler_params=cparams,
        )(a_norm, z, s)

    w_l2, w_r2, b2 = next_params
    kernel = functools.partial(_agg_fuse_next_kernel, tk=tk, resident_z=resident_z)
    w_spec = pl.BlockSpec((f_out, f_out), lambda i, k: (0, 0))      # VMEM-resident
    b_spec = pl.BlockSpec((1, f_out), lambda i, k: (0, 0))
    return pl.pallas_call(
        kernel,
        out_shape=(jax.ShapeDtypeStruct((n_pad, f_out), jnp.bfloat16),
                   jax.ShapeDtypeStruct((n_pad, f_out), jnp.float32)),
        grid=grid,
        in_specs=[a_spec, z_spec, s_spec, w_spec, w_spec, b_spec],
        out_specs=(row_spec, row_spec),
        scratch_shapes=[pltpu.VMEM((tm, f_out), jnp.float32)],
        compiler_params=cparams,
    )(a_norm, z, s, w_l2, w_r2, b2.reshape(1, f_out))


# ---------------------------------------------------------------------------
# Glue: bf16 normalized adjacency, padded parameters, forward pass.
# ---------------------------------------------------------------------------
def build_normalized_adjacency(edge_index, n_pad):
    """Dense A_norm[dst, src] = 1/in_degree(dst), built directly in bf16.

    Degrees come from a segment-sum over edges (no f32 N^2 intermediate), so
    peak HBM during construction is ~2*N^2 bytes instead of ~6*N^2.
    """
    src = edge_index[0].astype(jnp.int32)
    dst = edge_index[1].astype(jnp.int32)
    deg = jax.ops.segment_sum(jnp.ones_like(dst, dtype=jnp.float32), dst,
                              num_segments=n_pad)
    inv_deg = jnp.where(deg > 0, 1.0 / jnp.maximum(deg, 1.0), 0.0)
    vals = inv_deg[dst].astype(jnp.bfloat16)
    return jnp.zeros((n_pad, n_pad), jnp.bfloat16).at[dst, src].add(vals)


def _pad2d(w, rows, cols):
    return jnp.zeros((rows, cols), w.dtype).at[:w.shape[0], :w.shape[1]].set(w)


def init_params(key, in_channels, out_channels):
    """Logical (unpadded) parameters; weights stored transposed as (Fin, Fout)."""
    k1, k2, k3, k4 = jax.random.split(key, 4)
    s1 = 1.0 / jnp.sqrt(in_channels)
    s2 = 1.0 / jnp.sqrt(out_channels)
    return {
        "w_l1": jax.random.uniform(k1, (in_channels, out_channels),
                                   jnp.float32, -s1, s1),
        "w_r1": jax.random.uniform(k2, (in_channels, out_channels),
                                   jnp.float32, -s1, s1),
        "b1": jnp.zeros((out_channels,), jnp.float32),
        "w_l2": jax.random.uniform(k3, (out_channels, out_channels),
                                   jnp.float32, -s2, s2),
        "w_r2": jax.random.uniform(k4, (out_channels, out_channels),
                                   jnp.float32, -s2, s2),
        "b2": jnp.zeros((out_channels,), jnp.float32),
    }


def graphsage_forward(x, edge_index, params):
    n, f_in = x.shape
    f_out = params["w_l1"].shape[1]

    n_pad = _round_up(max(n, TILE_BASE), TILE_BASE)
    f_in_pad = _round_up(max(f_in, LANE), LANE)
    f_out_pad = _round_up(max(f_out, LANE), LANE)
    tm, tk = _choose_tiles(n_pad)

    # bf16 MXU operands; padded rows / columns are zero and therefore inert.
    x_p = (jnp.zeros((n_pad, f_in_pad), jnp.float32)
           .at[:n, :f_in].set(x).astype(jnp.bfloat16))
    a_norm = build_normalized_adjacency(edge_index, n_pad)

    w_l1 = _pad2d(params["w_l1"], f_in_pad, f_out_pad).astype(jnp.bfloat16)
    w_r1 = _pad2d(params["w_r1"], f_in_pad, f_out_pad).astype(jnp.bfloat16)
    b1 = jnp.zeros((f_out_pad,), jnp.float32).at[:f_out].set(params["b1"])
    w_l2 = _pad2d(params["w_l2"], f_out_pad, f_out_pad).astype(jnp.bfloat16)
    w_r2 = _pad2d(params["w_r2"], f_out_pad, f_out_pad).astype(jnp.bfloat16)
    b2 = jnp.zeros((f_out_pad,), jnp.float32).at[:f_out].set(params["b2"])

    # Layer-1 linear.
    z1, s1 = _linear_stage(x_p, w_l1, w_r1, b1, tm=tm)
    # Layer-1 aggregation + relu, fused with layer-2 linear.
    z2, s2 = _aggregate_stage(a_norm, z1, s1, tm=tm, tk=tk,
                              next_params=(w_l2, w_r2, b2))
    # Layer-2 aggregation + final relu (relu after conv2, as in the PyTorch module).
    out = _aggregate_stage(a_norm, z2, s2, tm=tm, tk=tk)
    return out[:n, :f_out]


def graphsage_reference(x, edge_index, params):
    """Pure-JAX f32 reference of the same SAGEConv semantics."""
    n = x.shape[0]
    src, dst = edge_index[0], edge_index[1]
    a = jnp.zeros((n, n), jnp.float32).at[dst, src].add(1.0)
    a = a / jnp.maximum(a.sum(axis=1, keepdims=True), 1.0)

    def conv(h, wl, wr, b):
        return jnp.maximum(a @ (h @ wl) + h @ wr + b, 0.0)

    h = conv(x, params["w_l1"], params["w_r1"], params["b1"])
    return conv(h, params["w_l2"], params["w_r2"], params["b2"])


if __name__ == "__main__":
    key = jax.random.PRNGKey(0)
    k_x, k_e, k_p = jax.random.split(key, 3)

    num_nodes = 16
    in_channels = 8
    out_channels = 32
    num_edges = 40

    x = jax.random.normal(k_x, (num_nodes, in_channels), jnp.float32)
    edge_index = jax.random.randint(k_e, (2, num_edges), 0, num_nodes,
                                    dtype=jnp.int32)
    params = init_params(k_p, in_channels, out_channels)

    out = graphsage_forward(x, edge_index, params)
    jax.block_until_ready(out)

    assert out.shape == (num_nodes, out_channels)
    assert bool(jnp.all(out >= 0.0))                 # relu output
    assert bool(jnp.all(jnp.isfinite(out)))

    # bf16 A / Z / weights => compare with loose tolerance vs the f32 reference.
    ref = graphsage_reference(x, edge_index, params)
    max_err = float(jnp.max(jnp.abs(out - ref)))
    assert max_err < 0.1, f"max abs error vs reference: {max_err}"

    print("KERNEL_OK")
</pallas_src>

<mosaic_0001>
module attributes {stable_mosaic.version = 11 : i64} {
  func.func @_linear_kernel(%arg0: i32, %arg1: memref<256x128xbf16, #tpu.memory_space<vmem>>, %arg2: memref<128x128xbf16, #tpu.memory_space<vmem>>, %arg3: memref<128x128xbf16, #tpu.memory_space<vmem>>, %arg4: memref<1x128xf32, #tpu.memory_space<vmem>>, %arg5: memref<256x128xbf16, #tpu.memory_space<vmem>>, %arg6: memref<256x128xf32, #tpu.memory_space<vmem>>) attributes {dimension_semantics = [#tpu.dimension_semantics<parallel>], iteration_bounds = array<i64: 1>, scalar_prefetch = 0 : i64, scratch_operands = 0 : i64, tpu.core_type = #tpu.core_type<tc>, window_params = [{transform_indices = @transform_0, window_bounds = array<i64: 256, 128>}, {pipeline_mode = #tpu.pipeline_mode<synchronous>, transform_indices = @transform_1, window_bounds = array<i64: 128, 128>}, {pipeline_mode = #tpu.pipeline_mode<synchronous>, transform_indices = @transform_2, window_bounds = array<i64: 128, 128>}, {pipeline_mode = #tpu.pipeline_mode<synchronous>, transform_indices = @transform_3, window_bounds = array<i64: 1, 128>}, {transform_indices = @transform_4, window_bounds = array<i64: 256, 128>}, {transform_indices = @transform_5, window_bounds = array<i64: 256, 128>}]} {
    %c0 = arith.constant 0 : index
    %c0_0 = arith.constant 0 : index
    %0 = vector.load %arg1[%c0, %c0_0] : memref<256x128xbf16, #tpu.memory_space<vmem>>, vector<256x128xbf16>
    %c0_1 = arith.constant 0 : index
    %c0_2 = arith.constant 0 : index
    %1 = vector.load %arg2[%c0_1, %c0_2] : memref<128x128xbf16, #tpu.memory_space<vmem>>, vector<128x128xbf16>
    %cst = arith.constant dense<0.000000e+00> : vector<256x128xf32>
    %2 = tpu.matmul %0, %1, %cst {dimension_numbers = #tpu.dot_dimension_numbers<[1], [0], [0], [1], [0, 0, 1, 1], [], []>} : vector<256x128xbf16>, vector<128x128xbf16>, vector<256x128xf32> -> vector<256x128xf32>
    %3 = arith.truncf %2 : vector<256x128xf32> to vector<256x128xbf16>
    %c0_3 = arith.constant 0 : index
    %c0_4 = arith.constant 0 : index
    %4 = vector.load %arg5[%c0_3, %c0_4] : memref<256x128xbf16, #tpu.memory_space<vmem>>, vector<256x128xbf16>
    tpu.vector_store %arg5[%c0_3, %c0_4], %3 {strides = array<i32>} : memref<256x128xbf16, #tpu.memory_space<vmem>>, vector<256x128xbf16>,
    %c0_5 = arith.constant 0 : index
    %c0_6 = arith.constant 0 : index
    %5 = vector.load %arg3[%c0_5, %c0_6] : memref<128x128xbf16, #tpu.memory_space<vmem>>, vector<128x128xbf16>
    %cst_7 = arith.constant dense<0.000000e+00> : vector<256x128xf32>
    %6 = tpu.matmul %0, %5, %cst_7 {dimension_numbers = #tpu.dot_dimension_numbers<[1], [0], [0], [1], [0, 0, 1, 1], [], []>} : vector<256x128xbf16>, vector<128x128xbf16>, vector<256x128xf32> -> vector<256x128xf32>
    %c0_8 = arith.constant 0 : index
    %c0_9 = arith.constant 0 : index
    %7 = vector.load %arg4[%c0_8, %c0_9] : memref<1x128xf32, #tpu.memory_space<vmem>>, vector<1x128xf32>
    %8 = vector.broadcast %7 : vector<1x128xf32> to vector<256x128xf32>
    %9 = arith.addf %6, %8 : vector<256x128xf32>
    %c0_10 = arith.constant 0 : index
    %c0_11 = arith.constant 0 : index
    %10 = vector.load %arg6[%c0_10, %c0_11] : memref<256x128xf32, #tpu.memory_space<vmem>>, vector<256x128xf32>
    tpu.vector_store %arg6[%c0_10, %c0_11], %9 {strides = array<i32>} : memref<256x128xf32, #tpu.memory_space<vmem>>, vector<256x128xf32>,
    return
  }
  func.func @transform_0(%arg0: i32) -> (i32, i32) {
    %c0_i32 = arith.constant 0 : i32
    %c0_i32_0 = arith.constant 0 : i32
    return %arg0, %c0_i32 : i32, i32
  }
  func.func @transform_1(%arg0: i32) -> (i32, i32) {
    %c0_i32 = arith.constant 0 : i32
    %c0_i32_0 = arith.constant 0 : i32
    %c0_i32_1 = arith.constant 0 : i32
    return %c0_i32, %c0_i32_0 : i32, i32
  }
  func.func @transform_2(%arg0: i32) -> (i32, i32) {
    %c0_i32 = arith.constant 0 : i32
    %c0_i32_0 = arith.constant 0 : i32
    %c0_i32_1 = arith.constant 0 : i32
    return %c0_i32, %c0_i32_0 : i32, i32
  }
  func.func @transform_3(%arg0: i32) -> (i32, i32) {
    %c0_i32 = arith.constant 0 : i32
    %c0_i32_0 = arith.constant 0 : i32
    %c0_i32_1 = arith.constant 0 : i32
    return %c0_i32, %c0_i32_0 : i32, i32
  }
  func.func @transform_4(%arg0: i32) -> (i32, i32) {
    %c0_i32 = arith.constant 0 : i32
    %c0_i32_0 = arith.constant 0 : i32
    return %arg0, %c0_i32 : i32, i32
  }
  func.func @transform_5(%arg0: i32) -> (i32, i32) {
    %c0_i32 = arith.constant 0 : i32
    %c0_i32_0 = arith.constant 0 : i32
    return %arg0, %c0_i32 : i32, i32
  }
}

</mosaic_0001>

<bundles_post_ra>
// kernel: tpu_custom_call.1
= control target key start
LH: loop header
LB: loop body
LE: loop exit
PB: predicated region body
PF: predicated region fallthrough
CT: control target
= control target key end

     0   :  { %11 = vsyncpa [#allocation3], 0  ;;  %s1462_s0 = inlined_call_operand.hbm [shape: bf16[256,128], index: 0, kind: input, shape index: {}]   ;;  %s1463_s1 = inlined_call_operand.hbm [shape: bf16[128,128], index: 1, kind: input, shape index: {}]   ;;  %s1464_s2 = inlined_call_operand.hbm [shape: bf16[128,128], index: 2, kind: input, shape index: {}]   ;;  %s1465_s3 = inlined_call_operand.vmem [shape: f32[1,128], index: 3, kind: input, shape index: {}]   ;;  %s1466_s4 = inlined_call_operand.hbm [shape: bf16[256,128], index: 4, kind: output, shape index: {0}]   ;;  %s1467_s5 = inlined_call_operand.hbm [shape: f32[256,128], index: 5, kind: output, shape index: {1}]  }
   0x1   :  { %12 = vsyncpa [#allocation6], 0 }
   0x2   :  { %13 = vsyncpa [#allocation4], 0 }
   0x3   :  { %14 = vsyncpa [#allocation10], 0  ;;  %s1359_s18 = smov [#allocation5]   ;;  %s1360_s20 = smov [#allocation2]  }
   0x4   :  { %s32_s19 = sshll.u32 %s1359_s18, 4  ;;  %s20_s21 = sshll.u32 %s1360_s20, 4  ;;  %s33_s19 = int_to_ptr.vmem [resolvable:$true] %s32_s19  ;;  %s21_s21 = int_to_ptr.vmem [resolvable:$true] %s20_s21 }
   0x5   :  { %s1259_s22 = scalar_lea.vmem %s33_s19, 1024  ;;  %p1264_p1 = scmp.lt.s32.totalorder %s33_s19, %s33_s19 }
   0x6   :  { %p1260_p0 = scmp.ne.s32.totalorder %s33_s19, %s1259_s22  ;;  %p1265_p2 = scmp.lt.s32.totalorder %s1259_s22, %s1259_s22 }
   0x8   :  { %p1266_p3 = por %p1265_p2, %p1264_p1 }
   0xa   :  { %p1267_p4 = pnand %p1266_p3, %p1260_p0 }
   0xc   :  { %1270 = shalt.err (!%p1267_p4)
}
   0xd   :  { %s1361_s23 = smov 64   ;;  %s1362_s24 = smov 4  }
   0xe   :  { %38 = dma.hbm_to_vmem [thread:$0]  %s1463_s1, 1024, %s33_s19, [#allocation6], %s1361_s23, %s1361_s23, %s1362_s24  }
   0xf   :  { %s1279_s27 = scalar_lea.vmem %s21_s21, 2048  ;;  %p1284_p6 = scmp.lt.s32.totalorder %s21_s21, %s21_s21 }
  0x10   :  { %p1280_p5 = scmp.ne.s32.totalorder %s21_s21, %s1279_s27  ;;  %p1285_p7 = scmp.lt.s32.totalorder %s1279_s27, %s1279_s27 }
  0x12   :  { %p1286_p8 = por %p1285_p7, %p1284_p6 }
  0x14   :  { %p1287_p9 = pnand %p1286_p8, %p1280_p5 }
  0x16   :  { %1290 = shalt.err (!%p1287_p9)
}
  0x17   :  { %26 = dma.hbm_to_vmem [thread:$0]  %s1462_s0, 2048, %s21_s21, [#allocation3], %s1361_s23, %s1361_s23, %s1362_s24  }
  0x18   :  { %s1363_s30 = smov [#allocation7]  }
  0x19   :  { %s44_s6 = sshll.u32 %s1363_s30, 4  ;;  %s45_s6 = int_to_ptr.vmem [resolvable:$true] %s44_s6 }
  0x1a   :  { %s1299_s7 = scalar_lea.vmem %s45_s6, 1024  ;;  %p1304_p11 = scmp.lt.s32.totalorder %s45_s6, %s45_s6 }
  0x1b   :  { %p1300_p10 = scmp.ne.s32.totalorder %s45_s6, %s1299_s7  ;;  %p1305_p12 = scmp.lt.s32.totalorder %s1299_s7, %s1299_s7 }
  0x1d   :  { %p1306_p13 = por %p1305_p12, %p1304_p11 }
  0x1f   :  { %p1307_p0 = pnand %p1306_p13, %p1300_p10 }
  0x21   :  { %1310 = shalt.err (!%p1307_p0)
}
  0x22   :  { %50 = dma.hbm_to_vmem [thread:$0]  %s1464_s2, 1024, %s45_s6, [#allocation6], %s1361_s23, %s1361_s23, %s1362_s24  }
  0x23   :  { %1351 = dma.done.wait [#allocation3], 2048  }
  0x24   :  { %1352 = vsyncadd [#allocation3], 4294965248 }
  0x25   :  { %1353 = dma.done.wait [#allocation6], 2048  }
  0x26   :  { %1354 = vsyncadd [#allocation6], 4294965248  ;;  %v1219_v0 = vld [vmem:[#allocation5 + $0x38] sm:$0xff]   ;;  %v1221_v2 = vld [vmem:[#allocation5 + $0x30] sm:$0xff]   ;;  %s1365_s10 = smov [#allocation9]  }
  0x27   :  { %v1220_v1 = vld [vmem:[#allocation7 + $0x38] sm:$0xff]   ;;  %1114 = vmatprep.subr.bf16.mxu0 %v1219_v0  ;;  %v1222_v3 = vld [vmem:[#allocation7 + $0x30] sm:$0xff]   ;;  %v1223_v4 = vld [vmem:[#allocation5 + $0x28] sm:$0xff]   ;;  %s857_s11 = sshll.u32 %s1365_s10, 4  ;;  %s858_s11 = int_to_ptr.vmem [resolvable:$true] %s857_s11 }
  0x28   :  { %1162 = vmatprep.subr.bf16.mxu1 %v1220_v1  ;;  %1115 = vmatpush3.bf16.msra.mxu0 %v1219_v0  ;;  %v1224_v5 = vld [vmem:[#allocation7 + $0x28] sm:$0xff]   ;;  %v1225_v6 = vld [vmem:[#allocation5 + $0x20] sm:$0xff]   ;;  %v1227_v8 = vld [vmem:[#allocation5 + $0x18] sm:$0xff]  }
  0x29   :  { %1163 = vmatpush3.bf16.msra.mxu1 %v1220_v1  ;;  %1116 = vmatprep.subr.bf16.mxu0 %v1221_v2  ;;  %v1226_v7 = vld [vmem:[#allocation7 + $0x20] sm:$0xff]   ;;  %v1228_v9 = vld [vmem:[#allocation7 + $0x18] sm:$0xff]   ;;  %v1229_v10 = vld [vmem:[#allocation5 + $0x10] sm:$0xff]  }
  0x2a   :  { %1164 = vmatprep.subr.bf16.mxu1 %v1222_v3  ;;  %v1235_v11 = vld [vmem:[#allocation2] sm:$0xff]   ;;  %v1230_v12 = vld [vmem:[#allocation7 + $0x10] sm:$0xff]   ;;  %v1231_v13 = vld [vmem:[#allocation5 + $0x8] sm:$0xff]  }
  0x2b   :  { %1130 = vmatprep.mubr.bf16.mxu0 %v1235_v11  ;;  %1178 = vmatprep.mubr.bf16.mxu1 %v1235_v11  ;;  %v1232_v14 = vld [vmem:[#allocation7 + $0x8] sm:$0xff]   ;;  %v1233_v15 = vld [vmem:[#allocation5] sm:$0xff]   ;;  %v1237_v18 = vld [vmem:[#allocation2 + $0x10] sm:$0xff]  }
  0x2c   :  { %1117 = vmatpush3.bf16.msra.mxu0 %v1221_v2  ;;  %v1234_v16 = vld [vmem:[#allocation7] sm:$0xff]   ;;  %v1236_v17 = vld [vmem:[#allocation2 + $0x8] sm:$0xff]   ;;  %v1238_v19 = vld [vmem:[#allocation2 + $0x18] sm:$0xff]  }
  0x2d   :  { %1165 = vmatpush3.bf16.msra.mxu1 %v1222_v3  ;;  %1118 = vmatprep.subr.bf16.mxu0 %v1223_v4  ;;  %v1239_v20 = vld [vmem:[#allocation2 + $0x20] sm:$0xff]   ;;  %v1240_v21 = vld [vmem:[#allocation2 + $0x28] sm:$0xff]   ;;  %v1241_v22 = vld [vmem:[#allocation2 + $0x30] sm:$0xff]  }
  0x2e   :  { %1166 = vmatprep.subr.bf16.mxu1 %v1224_v5  ;;  %v1242_v23 = vld [vmem:[#allocation2 + $0x38] sm:$0xff]   ;;  %v1243_v24 = vld [vmem:[#allocation2 + $0x40] sm:$0xff]   ;;  %v1244_v25 = vld [vmem:[#allocation2 + $0x48] sm:$0xff]  }
  0x2f   :  { %v1245_v26 = vld [vmem:[#allocation2 + $0x50] sm:$0xff]   ;;  %v1246_v27 = vld [vmem:[#allocation2 + $0x58] sm:$0xff]   ;;  %v1247_v28 = vld [vmem:[#allocation2 + $0x60] sm:$0xff]  }
  0x30   :  { %1119 = vmatpush3.bf16.msra.mxu0 %v1223_v4  ;;  %v1248_v29 = vld [vmem:[#allocation2 + $0x68] sm:$0xff]   ;;  %v1249_v30 = vld [vmem:[#allocation2 + $0x70] sm:$0xff]   ;;  %v1250_v31 = vld [vmem:[#allocation2 + $0x78] sm:$0xff]  }
  0x31   :  { %1167 = vmatpush3.bf16.msra.mxu1 %v1224_v5  ;;  %1120 = vmatprep.subr.bf16.mxu0 %v1225_v6  ;;  %v1419_v32 = vld [vmem:[%s1465_s3] ss:$0 sm:$0xff]  ;;  %s1364_s3 = smov [#allocation8]  }
  0x32   :  { %1168 = vmatprep.subr.bf16.mxu1 %v1226_v7  ;;  %s845_s9 = sshll.u32 %s1364_s3, 4  ;;  %s846_s9 = int_to_ptr.vmem [resolvable:$true] %s845_s9 }
  0x33   :  { %s1311_s12 = scalar_lea.vmem %s846_s9, 2048  ;;  %p1316_p2 = scmp.lt.s32.totalorder %s846_s9, %s846_s9 }
  0x34   :  { %1121 = vmatpush3.bf16.msra.mxu0 %v1225_v6  ;;  %p1312_p1 = scmp.ne.s32.totalorder %s846_s9, %s1311_s12  ;;  %p1317_p3 = scmp.lt.s32.totalorder %s1311_s12, %s1311_s12 }
  0x35   :  { %1169 = vmatpush3.bf16.msra.mxu1 %v1226_v7  ;;  %1122 = vmatprep.subr.bf16.mxu0 %v1227_v8 }
  0x36   :  { %1170 = vmatprep.subr.bf16.mxu1 %v1228_v9  ;;  %p1318_p4 = por %p1317_p3, %p1316_p2 }
  0x38   :  { %1123 = vmatpush3.bf16.msra.mxu0 %v1227_v8  ;;  %p1319_p5 = pnand %p1318_p4, %p1312_p1 }
  0x39   :  { %1171 = vmatpush3.bf16.msra.mxu1 %v1228_v9  ;;  %1124 = vmatprep.subr.bf16.mxu0 %v1229_v10 }
  0x3a   :  { %1172 = vmatprep.subr.bf16.mxu1 %v1230_v12 }
  0x3c   :  { %1125 = vmatpush3.bf16.msra.mxu0 %v1229_v10 }
  0x3d   :  { %1173 = vmatpush3.bf16.msra.mxu1 %v1230_v12  ;;  %1126 = vmatprep.subr.bf16.mxu0 %v1231_v13 }
  0x3e   :  { %1174 = vmatprep.subr.bf16.mxu1 %v1232_v14 }
  0x40   :  { %1127 = vmatpush3.bf16.msra.mxu0 %v1231_v13 }
  0x41   :  { %1175 = vmatpush3.bf16.msra.mxu1 %v1232_v14  ;;  %1128 = vmatprep.subr.bf16.mxu0 %v1233_v15 }
  0x42   :  { %1176 = vmatprep.subr.bf16.mxu1 %v1234_v16 }
  0x44   :  { %1129 = vmatpush3.bf16.msra.mxu0 %v1233_v15 }
  0x45   :  { %1177 = vmatpush3.bf16.msra.mxu1 %v1234_v16 }
  0x47   :  { %1131 = vmatmul.mubr.bf16.vlgmr.msra.gmra.mxu0 %v1236_v17 }
  0x48   :  { %1179 = vmatmul.mubr.bf16.vlgmr.msra.gmra.mxu1 %v1236_v17  ;;  %1134 = vmatprep.mubr.bf16.mxu0 %v1237_v18 }
  0x49   :  { %1182 = vmatprep.mubr.bf16.mxu1 %v1237_v18 }
  0x4f   :  { %1135 = vmatmul.mubr.bf16.gmra.mxu0 %v1238_v19 }
  0x50   :  { %1183 = vmatmul.mubr.bf16.gmra.mxu1 %v1238_v19  ;;  %1138 = vmatprep.mubr.bf16.mxu0 %v1239_v20 }
  0x51   :  { %1186 = vmatprep.mubr.bf16.mxu1 %v1239_v20 }
  0x57   :  { %1139 = vmatmul.mubr.bf16.gmra.mxu0 %v1240_v21 }
  0x58   :  { %1187 = vmatmul.mubr.bf16.gmra.mxu1 %v1240_v21  ;;  %1142 = vmatprep.mubr.bf16.mxu0 %v1241_v22 }
  0x59   :  { %1190 = vmatprep.mubr.bf16.mxu1 %v1241_v22 }
  0x5f   :  { %1143 = vmatmul.mubr.bf16.gmra.mxu0 %v1242_v23 }
  0x60   :  { %1191 = vmatmul.mubr.bf16.gmra.mxu1 %v1242_v23  ;;  %1146 = vmatprep.mubr.bf16.mxu0 %v1243_v24 }
  0x61   :  { %1194 = vmatprep.mubr.bf16.mxu1 %v1243_v24 }
  0x67   :  { %1147 = vmatmul.mubr.bf16.gmra.mxu0 %v1244_v25 }
  0x68   :  { %1195 = vmatmul.mubr.bf16.gmra.mxu1 %v1244_v25  ;;  %1150 = vmatprep.mubr.bf16.mxu0 %v1245_v26 }
  0x69   :  { %1198 = vmatprep.mubr.bf16.mxu1 %v1245_v26 }
  0x6f   :  { %1151 = vmatmul.mubr.bf16.gmra.mxu0 %v1246_v27 }
  0x70   :  { %1199 = vmatmul.mubr.bf16.gmra.mxu1 %v1246_v27  ;;  %1154 = vmatprep.mubr.bf16.mxu0 %v1247_v28 }
  0x71   :  { %1202 = vmatprep.mubr.bf16.mxu1 %v1247_v28 }
  0x77   :  { %1155 = vmatmul.mubr.bf16.gmra.mxu0 %v1248_v29 }
  0x78   :  { %1203 = vmatmul.mubr.bf16.gmra.mxu1 %v1248_v29  ;;  %1158 = vmatprep.mubr.bf16.mxu0 %v1249_v30 }
  0x79   :  { %1206 = vmatprep.mubr.bf16.mxu1 %v1249_v30 }
  0x7f   :  { %1159 = vmatmul.mubr.bf16.gmra.mxu0 %v1250_v31 }
  0x80   :  { %1207 = vmatmul.mubr.bf16.gmra.mxu1 %v1250_v31 }
 0x107   :  { %v1132_v33 = vpop.f32.mrf.mxu0 }
 0x108   :  { %v1180_v34 = vpop.f32.mrf.mxu1 }
 0x109   :  { %v690_v35 = vadd.f32 %v1180_v34, %v1419_v32  ;;  %v289_v36 = vpop.f32.mrf.mxu0 }
 0x10a   :  { %v681_v37 = vpop.f32.mrf.mxu1 }
 0x10b   :  { %810 = vst [vmem:[#allocation9 + $0x10] sm:$0xff] %v690_v35  ;;  %v682_v38 = vadd.f32 %v1419_v32, %v681_v37  ;;  %v1133_v39 = vpop.f32.mrf.mxu0 }
 0x10c   :  { %v979_v40 = vpack.c.bf16 %v1133_v39, %v1132_v33  ;;  %v1181_v41 = vpop.f32.mrf.mxu1 }
 0x10d   :  { %808 = vst [vmem:[#allocation9] sm:$0xff] %v682_v38  ;;  %v693_v42 = vadd.f32 %v1181_v41, %v1419_v32  ;;  %v292_v43 = vpop.f32.mrf.mxu0 }
 0x10e   :  { %1051 = vst [vmem:[#allocation8 + $0x8] sm:$0xff] %v979_v40   ;;  %v974_v44 = vpack.c.bf16 %v292_v43, %v289_v36  ;;  %v684_v45 = vpop.f32.mrf.mxu1 }
 0x10f   :  { %811 = vst [vmem:[#allocation9 + $0x18] sm:$0xff] %v693_v42  ;;  %v685_v46 = vadd.f32 %v1419_v32, %v684_v45  ;;  %v1136_v47 = vpop.f32.mrf.mxu0 }
 0x110   :  { %975 = vst [vmem:[#allocation8] sm:$0xff] %v974_v44   ;;  %v1184_v48 = vpop.f32.mrf.mxu1 }
 0x111   :  { %809 = vst [vmem:[#allocation9 + $0x8] sm:$0xff] %v685_v46  ;;  %v706_v49 = vadd.f32 %v1184_v48, %v1419_v32  ;;  %v305_v50 = vpop.f32.mrf.mxu0 }
 0x112   :  { %v697_v51 = vpop.f32.mrf.mxu1 }
 0x113   :  { %814 = vst [vmem:[#allocation9 + $0x30] sm:$0xff] %v706_v49  ;;  %v698_v52 = vadd.f32 %v1419_v32, %v697_v51  ;;  %v1137_v53 = vpop.f32.mrf.mxu0 }
 0x114   :  { %v989_v54 = vpack.c.bf16 %v1137_v53, %v1136_v47  ;;  %v1185_v55 = vpop.f32.mrf.mxu1 }
 0x115   :  { %812 = vst [vmem:[#allocation9 + $0x20] sm:$0xff] %v698_v52  ;;  %v709_v56 = vadd.f32 %v1185_v55, %v1419_v32  ;;  %v308_v57 = vpop.f32.mrf.mxu0 }
 0x116   :  { %1053 = vst [vmem:[#allocation8 + $0x18] sm:$0xff] %v989_v54   ;;  %v984_v58 = vpack.c.bf16 %v308_v57, %v305_v50  ;;  %v700_v59 = vpop.f32.mrf.mxu1 }
 0x117   :  { %815 = vst [vmem:[#allocation9 + $0x38] sm:$0xff] %v709_v56  ;;  %v701_v60 = vadd.f32 %v1419_v32, %v700_v59  ;;  %v1140_v61 = vpop.f32.mrf.mxu0 }
 0x118   :  { %1052 = vst [vmem:[#allocation8 + $0x10] sm:$0xff] %v984_v58   ;;  %v1188_v62 = vpop.f32.mrf.mxu1 }
 0x119   :  { %813 = vst [vmem:[#allocation9 + $0x28] sm:$0xff] %v701_v60  ;;  %v722_v63 = vadd.f32 %v1188_v62, %v1419_v32  ;;  %v321_v0 = vpop.f32.mrf.mxu0 }
 0x11a   :  { %v713_v1 = vpop.f32.mrf.mxu1 }
 0x11b   :  { %818 = vst [vmem:[#allocation9 + $0x50] sm:$0xff] %v722_v63  ;;  %v714_v2 = vadd.f32 %v1419_v32, %v713_v1  ;;  %v1141_v3 = vpop.f32.mrf.mxu0 }
 0x11c   :  { %v999_v4 = vpack.c.bf16 %v1141_v3, %v1140_v61  ;;  %v1189_v5 = vpop.f32.mrf.mxu1 }
 0x11d   :  { %816 = vst [vmem:[#allocation9 + $0x40] sm:$0xff] %v714_v2  ;;  %v725_v6 = vadd.f32 %v1189_v5, %v1419_v32  ;;  %v324_v7 = vpop.f32.mrf.mxu0 }
 0x11e   :  { %1055 = vst [vmem:[#allocation8 + $0x28] sm:$0xff] %v999_v4   ;;  %v994_v8 = vpack.c.bf16 %v324_v7, %v321_v0  ;;  %v716_v9 = vpop.f32.mrf.mxu1 }
 0x11f   :  { %819 = vst [vmem:[#allocation9 + $0x58] sm:$0xff] %v725_v6  ;;  %v717_v10 = vadd.f32 %v1419_v32, %v716_v9  ;;  %v1144_v11 = vpop.f32.mrf.mxu0 }
 0x120   :  { %1054 = vst [vmem:[#allocation8 + $0x20] sm:$0xff] %v994_v8   ;;  %v1192_v12 = vpop.f32.mrf.mxu1 }
 0x121   :  { %817 = vst [vmem:[#allocation9 + $0x48] sm:$0xff] %v717_v10  ;;  %v738_v13 = vadd.f32 %v1192_v12, %v1419_v32  ;;  %v337_v14 = vpop.f32.mrf.mxu0 }
 0x122   :  { %v729_v15 = vpop.f32.mrf.mxu1 }
 0x123   :  { %822 = vst [vmem:[#allocation9 + $0x70] sm:$0xff] %v738_v13  ;;  %v730_v16 = vadd.f32 %v1419_v32, %v729_v15  ;;  %v1145_v17 = vpop.f32.mrf.mxu0 }
 0x124   :  { %v1009_v18 = vpack.c.bf16 %v1145_v17, %v1144_v11  ;;  %v1193_v19 = vpop.f32.mrf.mxu1 }
 0x125   :  { %820 = vst [vmem:[#allocation9 + $0x60] sm:$0xff] %v730_v16  ;;  %v741_v20 = vadd.f32 %v1193_v19, %v1419_v32  ;;  %v340_v21 = vpop.f32.mrf.mxu0 }
 0x126   :  { %1057 = vst [vmem:[#allocation8 + $0x38] sm:$0xff] %v1009_v18   ;;  %v1004_v22 = vpack.c.bf16 %v340_v21, %v337_v14  ;;  %v732_v23 = vpop.f32.mrf.mxu1 }
 0x127   :  { %823 = vst [vmem:[#allocation9 + $0x78] sm:$0xff] %v741_v20  ;;  %v733_v24 = vadd.f32 %v1419_v32, %v732_v23  ;;  %v1148_v25 = vpop.f32.mrf.mxu0 }
 0x128   :  { %1056 = vst [vmem:[#allocation8 + $0x30] sm:$0xff] %v1004_v22   ;;  %v1196_v26 = vpop.f32.mrf.mxu1 }
 0x129   :  { %821 = vst [vmem:[#allocation9 + $0x68] sm:$0xff] %v733_v24  ;;  %v754_v27 = vadd.f32 %v1196_v26, %v1419_v32  ;;  %v353_v28 = vpop.f32.mrf.mxu0 }
 0x12a   :  { %v745_v29 = vpop.f32.mrf.mxu1 }
 0x12b   :  { %826 = vst [vmem:[#allocation9 + $0x90] sm:$0xff] %v754_v27  ;;  %v746_v30 = vadd.f32 %v1419_v32, %v745_v29  ;;  %v1149_v31 = vpop.f32.mrf.mxu0 }
 0x12c   :  { %v1019_v33 = vpack.c.bf16 %v1149_v31, %v1148_v25  ;;  %v1197_v34 = vpop.f32.mrf.mxu1 }
 0x12d   :  { %824 = vst [vmem:[#allocation9 + $0x80] sm:$0xff] %v746_v30  ;;  %v757_v35 = vadd.f32 %v1197_v34, %v1419_v32  ;;  %v356_v36 = vpop.f32.mrf.mxu0 }
 0x12e   :  { %1059 = vst [vmem:[#allocation8 + $0x48] sm:$0xff] %v1019_v33   ;;  %v1014_v37 = vpack.c.bf16 %v356_v36, %v353_v28  ;;  %v748_v38 = vpop.f32.mrf.mxu1 }
 0x12f   :  { %827 = vst [vmem:[#allocation9 + $0x98] sm:$0xff] %v757_v35  ;;  %v749_v39 = vadd.f32 %v1419_v32, %v748_v38  ;;  %v1152_v40 = vpop.f32.mrf.mxu0 }
 0x130   :  { %1058 = vst [vmem:[#allocation8 + $0x40] sm:$0xff] %v1014_v37   ;;  %v1200_v41 = vpop.f32.mrf.mxu1 }
 0x131   :  { %825 = vst [vmem:[#allocation9 + $0x88] sm:$0xff] %v749_v39  ;;  %v770_v42 = vadd.f32 %v1200_v41, %v1419_v32  ;;  %v369_v43 = vpop.f32.mrf.mxu0 }
 0x132   :  { %v761_v44 = vpop.f32.mrf.mxu1 }
 0x133   :  { %830 = vst [vmem:[#allocation9 + $0xb0] sm:$0xff] %v770_v42  ;;  %v762_v45 = vadd.f32 %v1419_v32, %v761_v44  ;;  %v1153_v46 = vpop.f32.mrf.mxu0 }
 0x134   :  { %v1029_v47 = vpack.c.bf16 %v1153_v46, %v1152_v40  ;;  %v1201_v48 = vpop.f32.mrf.mxu1 }
 0x135   :  { %828 = vst [vmem:[#allocation9 + $0xa0] sm:$0xff] %v762_v45  ;;  %v773_v49 = vadd.f32 %v1201_v48, %v1419_v32  ;;  %v372_v50 = vpop.f32.mrf.mxu0 }
 0x136   :  { %1061 = vst [vmem:[#allocation8 + $0x58] sm:$0xff] %v1029_v47   ;;  %v1024_v51 = vpack.c.bf16 %v372_v50, %v369_v43  ;;  %v764_v52 = vpop.f32.mrf.mxu1 }
 0x137   :  { %831 = vst [vmem:[#allocation9 + $0xb8] sm:$0xff] %v773_v49  ;;  %v765_v53 = vadd.f32 %v1419_v32, %v764_v52  ;;  %v1156_v54 = vpop.f32.mrf.mxu0 }
 0x138   :  { %1060 = vst [vmem:[#allocation8 + $0x50] sm:$0xff] %v1024_v51   ;;  %v1204_v55 = vpop.f32.mrf.mxu1 }
 0x139   :  { %829 = vst [vmem:[#allocation9 + $0xa8] sm:$0xff] %v765_v53  ;;  %v786_v56 = vadd.f32 %v1204_v55, %v1419_v32  ;;  %v385_v57 = vpop.f32.mrf.mxu0 }
 0x13a   :  { %v777_v58 = vpop.f32.mrf.mxu1 }
 0x13b   :  { %834 = vst [vmem:[#allocation9 + $0xd0] sm:$0xff] %v786_v56  ;;  %v778_v59 = vadd.f32 %v1419_v32, %v777_v58  ;;  %v1157_v60 = vpop.f32.mrf.mxu0 }
 0x13c   :  { %v1039_v61 = vpack.c.bf16 %v1157_v60, %v1156_v54  ;;  %v1205_v62 = vpop.f32.mrf.mxu1 }
 0x13d   :  { %832 = vst [vmem:[#allocation9 + $0xc0] sm:$0xff] %v778_v59  ;;  %v789_v63 = vadd.f32 %v1205_v62, %v1419_v32  ;;  %v388_v0 = vpop.f32.mrf.mxu0 }
 0x13e   :  { %1063 = vst [vmem:[#allocation8 + $0x68] sm:$0xff] %v1039_v61   ;;  %v1034_v1 = vpack.c.bf16 %v388_v0, %v385_v57  ;;  %v780_v2 = vpop.f32.mrf.mxu1 }
 0x13f   :  { %835 = vst [vmem:[#allocation9 + $0xd8] sm:$0xff] %v789_v63  ;;  %v781_v3 = vadd.f32 %v1419_v32, %v780_v2  ;;  %v1160_v4 = vpop.f32.mrf.mxu0 }
 0x140   :  { %1062 = vst [vmem:[#allocation8 + $0x60] sm:$0xff] %v1034_v1   ;;  %v1208_v5 = vpop.f32.mrf.mxu1 }
 0x141   :  { %833 = vst [vmem:[#allocation9 + $0xc8] sm:$0xff] %v781_v3  ;;  %v802_v6 = vadd.f32 %v1208_v5, %v1419_v32  ;;  %v401_v7 = vpop.f32.mrf.mxu0 }
 0x142   :  { %v793_v8 = vpop.f32.mrf.mxu1 }
 0x143   :  { %838 = vst [vmem:[#allocation9 + $0xf0] sm:$0xff] %v802_v6  ;;  %v794_v9 = vadd.f32 %v1419_v32, %v793_v8  ;;  %v1161_v10 = vpop.f32.mrf.mxu0 }
 0x144   :  { %v1049_v11 = vpack.c.bf16 %v1161_v10, %v1160_v4  ;;  %v1209_v12 = vpop.f32.mrf.mxu1 }
 0x145   :  { %836 = vst [vmem:[#allocation9 + $0xe0] sm:$0xff] %v794_v9  ;;  %v805_v13 = vadd.f32 %v1209_v12, %v1419_v32  ;;  %v404_v14 = vpop.f32.mrf.mxu0 }
 0x146   :  { %1065 = vst [vmem:[#allocation8 + $0x78] sm:$0xff] %v1049_v11   ;;  %v1044_v15 = vpack.c.bf16 %v404_v14, %v401_v7  ;;  %v796_v16 = vpop.f32.mrf.mxu1 }
 0x147   :  { %839 = vst [vmem:[#allocation9 + $0xf8] sm:$0xff] %v805_v13  ;;  %v797_v17 = vadd.f32 %v1419_v32, %v796_v16 }
 0x148   :  { %1064 = vst [vmem:[#allocation8 + $0x70] sm:$0xff] %v1044_v15  }
 0x149   :  { %837 = vst [vmem:[#allocation9 + $0xe8] sm:$0xff] %v797_v17 }
 0x14a   :  { %1322 = shalt.err (!%p1319_p5)
}
 0x14b   :  { %851 = dma.vmem_to_hbm [thread:$0]  %s846_s9, 2048, %s1466_s4, [#allocation4], %s1361_s23, %s1361_s23, %s1362_s24  }
 0x14c   :  { %s1331_s15 = scalar_lea.vmem %s858_s11, 4096  ;;  %p1336_p7 = scmp.lt.s32.totalorder %s858_s11, %s858_s11 }
 0x14d   :  { %p1332_p6 = scmp.ne.s32.totalorder %s858_s11, %s1331_s15  ;;  %p1337_p8 = scmp.lt.s32.totalorder %s1331_s15, %s1331_s15 }
 0x14f   :  { %p1338_p9 = por %p1337_p8, %p1336_p7 }
 0x151   :  { %p1339_p10 = pnand %p1338_p9, %p1332_p6 }
 0x153   :  { %1342 = shalt.err (!%p1339_p10)
}
 0x154   :  { %s1366_s16 = smov 128   ;;  %s1367_s17 = smov 8  }
 0x155   :  { %863 = dma.vmem_to_hbm [thread:$0]  %s858_s11, 4096, %s1467_s5, [#allocation10], %s1366_s16, %s1366_s16, %s1367_s17  }
 0x156   :  { %1355 = dma.done.wait [#allocation4], 2048  }
 0x157   :  { %1356 = vsyncadd [#allocation4], 4294965248 }
 0x158   :  { %1357 = dma.done.wait [#allocation10], 4096  }
 0x159   :  { %1358 = vsyncadd [#allocation10], 4294963200 }
 0x15a   :  { %870 = vsyncpa [#allocation3], 1 }
 0x15b   :  { %871 = vsyncpa [#allocation6], 1 }
 0x15c   :  { %872 = vsyncpa [#allocation4], 1 }
 0x15d   :  { %873 = vsyncpa [#allocation10], 1 }

</bundles_post_ra>
